<compile_context>
chip_gen: v5e
topology: v5e:2x2
jax: 0.10.0
libtpu: 0.0.40
codegen_flags: <defaults>
</compile_context>

<pallas_src>
import numpy as np
import jax
import jax.numpy as jnp
from jax.experimental import pallas as pl
from jax.experimental.pallas import tpu as pltpu


def _round_up(x, m):
    return ((x + m - 1) // m) * m


def _gcn_kernel(x_ref, wa_ref, o_ref):
    # out_tile = x_tile @ (W @ A)  -- single MXU GEMM, f32 accumulation.
    o_ref[...] = jnp.dot(
        x_ref[...], wa_ref[...], preferred_element_type=jnp.float32
    ).astype(o_ref.dtype)


def _vmem_block_bytes(rows, cols, itemsize=4):
    # Actual VMEM footprint of a block: second-last dim pads to 8 sublanes,
    # last dim pads to 128 lanes.
    return _round_up(max(rows, 1), 8) * _round_up(max(cols, 1), 128) * itemsize


def _pick_row_tile(n, node_tile):
    """Row tile: multiple of 8, capped at node_tile, floor 2048, and shrunk
    so the grid has >= ~8 steps when n is large (pipeline depth + megacore)."""
    n8 = _round_up(n, 8)
    tm = min(node_tile, n8)
    if n8 // tm < 8:
        tm = max(2048, _round_up(pl.cdiv(n8, 8), 8))
        tm = min(tm, node_tile, n8)
    return tm


def graph_convolution(x, weight, adjacency_matrix, *, node_tile=8192,
                      pallas_min_bytes=256 * 1024):
    """Pallas implementation of GraphConvolution.forward: (x @ W) @ A."""
    n, f_in = x.shape
    f_in_w, f_out = weight.shape
    c0, c1 = adjacency_matrix.shape
    assert f_in == f_in_w and f_out == c0 and c0 == c1

    # Fold the two matmuls: (x @ W) @ A == x @ (W @ A); W, A are static params.
    wa = jnp.dot(weight, adjacency_matrix, preferred_element_type=jnp.float32)

    # Small-problem fast path: a custom call is pure launch overhead here.
    if n * f_in * x.dtype.itemsize < pallas_min_bytes:
        return jnp.dot(x, wa, preferred_element_type=jnp.float32)

    tm = _pick_row_tile(n, node_tile)
    grid = (pl.cdiv(n, tm),)

    # VMEM budget from lane-padded block shapes: double-buffered x / out tiles
    # plus the resident W@A (counted as 2 buffers to be conservative).
    vmem_bytes = (2 * _vmem_block_bytes(tm, f_in)
                  + 2 * _vmem_block_bytes(tm, f_out)
                  + 2 * _vmem_block_bytes(f_in, f_out))
    vmem_limit = int(min(max(vmem_bytes + (4 << 20), 8 << 20), 64 << 20))

    cost = pl.CostEstimate(
        flops=2 * n * f_in * f_out,
        transcendentals=0,
        bytes_accessed=4 * (n * f_in + f_in * f_out + n * f_out),
    )

    out = pl.pallas_call(
        _gcn_kernel,
        out_shape=jax.ShapeDtypeStruct((n, f_out), jnp.float32),
        grid=grid,
        in_specs=[
            # Streamed x row-tiles; f_in is the full array width (no pad
            # needed: last dim == full dim satisfies the (8,128) rule).
            pl.BlockSpec((tm, f_in), lambda i: (i, 0)),
            # Resident W @ A (constant index_map).
            pl.BlockSpec((f_in, f_out), lambda i: (0, 0)),
        ],
        # Output last dim == full array dim (8): no 16x HBM write inflation.
        out_specs=pl.BlockSpec((tm, f_out), lambda i: (i, 0)),
        compiler_params=pltpu.CompilerParams(
            dimension_semantics=("parallel",),
            vmem_limit_bytes=vmem_limit,
        ),
        cost_estimate=cost,
    )(x, wa)
    return out


def gen_A_synthetic(num_classes, t, key):
    """Deterministic in-script replica of gen_A's math (no pickle file)."""
    k_adj, k_nums = jax.random.split(key)
    _adj = np.asarray(
        jax.random.uniform(k_adj, (num_classes, num_classes), dtype=jnp.float32)
    ).astype(np.float64)
    _nums = np.asarray(
        jax.random.randint(k_nums, (num_classes,), 1, 10)
    ).astype(np.float64)
    _nums = _nums[:, np.newaxis]
    _adj = _adj / _nums
    _adj[_adj < t] = 0
    _adj[_adj >= t] = 1
    _adj = _adj * 0.25 / (_adj.sum(0, keepdims=True) + 1e-06)
    _adj = _adj + np.identity(num_classes, np.int64)
    return jnp.asarray(_adj, dtype=jnp.float32)


def xavier_uniform(key, in_features, out_features):
    bound = float(np.sqrt(6.0 / (in_features + out_features)))
    return jax.random.uniform(
        key, (in_features, out_features), dtype=jnp.float32,
        minval=-bound, maxval=bound,
    )


if __name__ == "__main__":
    # Small shapes consistent with the module:
    #   num_classes (labels) = 8  -> adjacency (8, 8), out_features = 8
    #   in_features = 32, x has one row per class node.
    num_classes = 8
    in_features = 32
    out_features = num_classes

    key = jax.random.PRNGKey(0)
    k_x, k_w, k_a, k_big = jax.random.split(key, 4)

    x = jax.random.normal(k_x, (num_classes, in_features), dtype=jnp.float32)
    weight = xavier_uniform(k_w, in_features, out_features)
    adjacency_matrix = gen_A_synthetic(num_classes, 0.4, k_a)

    # 1) Module-consistent small shape; force the Pallas path so the kernel
    #    itself is exercised (default threshold would take the jnp fast path).
    out = graph_convolution(x, weight, adjacency_matrix, pallas_min_bytes=0)
    out = jax.block_until_ready(out)
    ref = (x @ weight) @ adjacency_matrix
    np.testing.assert_allclose(np.asarray(out), np.asarray(ref),
                               rtol=1e-4, atol=1e-4)

    # 2) Multi-tile check (exercises the streamed row-tile grid).
    x_big = jax.random.normal(k_big, (4096, in_features), dtype=jnp.float32)
    out_big = graph_convolution(x_big, weight, adjacency_matrix)
    out_big = jax.block_until_ready(out_big)
    ref_big = (x_big @ weight) @ adjacency_matrix
    np.testing.assert_allclose(np.asarray(out_big), np.asarray(ref_big),
                               rtol=1e-4, atol=1e-4)

    # 3) Default fast path at the tiny demo shape (plain jnp, no custom call).
    out_fast = jax.block_until_ready(
        graph_convolution(x, weight, adjacency_matrix))
    np.testing.assert_allclose(np.asarray(out_fast), np.asarray(ref),
                               rtol=1e-4, atol=1e-4)

    print("KERNEL_OK")
</pallas_src>

<mosaic_0001>
module attributes {stable_mosaic.version = 11 : i64} {
  func.func @_gcn_kernel(%arg0: i32, %arg1: memref<8x32xf32, #tpu.memory_space<vmem>>, %arg2: memref<32x8xf32, #tpu.memory_space<vmem>>, %arg3: memref<8x8xf32, #tpu.memory_space<vmem>>) attributes {dimension_semantics = [#tpu.dimension_semantics<parallel>], iteration_bounds = array<i64: 1>, scalar_prefetch = 0 : i64, scratch_operands = 0 : i64, tpu.core_type = #tpu.core_type<tc>, window_params = [{transform_indices = @transform_0, window_bounds = array<i64: 8, 32>}, {pipeline_mode = #tpu.pipeline_mode<synchronous>, transform_indices = @transform_1, window_bounds = array<i64: 32, 8>}, {transform_indices = @transform_2, window_bounds = array<i64: 8, 8>}]} {
    %c0 = arith.constant 0 : index
    %c0_0 = arith.constant 0 : index
    %0 = vector.load %arg1[%c0, %c0_0] : memref<8x32xf32, #tpu.memory_space<vmem>>, vector<8x32xf32>
    %c0_1 = arith.constant 0 : index
    %c0_2 = arith.constant 0 : index
    %1 = vector.load %arg2[%c0_1, %c0_2] : memref<32x8xf32, #tpu.memory_space<vmem>>, vector<32x8xf32>
    %cst = arith.constant dense<0.000000e+00> : vector<8x8xf32>
    %2 = tpu.matmul %0, %1, %cst {dimension_numbers = #tpu.dot_dimension_numbers<[1], [0], [0], [1], [0, 0, 1, 1], [], []>} : vector<8x32xf32>, vector<32x8xf32>, vector<8x8xf32> -> vector<8x8xf32>
    %c0_3 = arith.constant 0 : index
    %c0_4 = arith.constant 0 : index
    %3 = vector.load %arg3[%c0_3, %c0_4] : memref<8x8xf32, #tpu.memory_space<vmem>>, vector<8x8xf32>
    tpu.vector_store %arg3[%c0_3, %c0_4], %2 {strides = array<i32>} : memref<8x8xf32, #tpu.memory_space<vmem>>, vector<8x8xf32>,
    return
  }
  func.func @transform_0(%arg0: i32) -> (i32, i32) {
    %c0_i32 = arith.constant 0 : i32
    %c0_i32_0 = arith.constant 0 : i32
    return %arg0, %c0_i32 : i32, i32
  }
  func.func @transform_1(%arg0: i32) -> (i32, i32) {
    %c0_i32 = arith.constant 0 : i32
    %c0_i32_0 = arith.constant 0 : i32
    %c0_i32_1 = arith.constant 0 : i32
    return %c0_i32, %c0_i32_0 : i32, i32
  }
  func.func @transform_2(%arg0: i32) -> (i32, i32) {
    %c0_i32 = arith.constant 0 : i32
    %c0_i32_0 = arith.constant 0 : i32
    return %arg0, %c0_i32 : i32, i32
  }
}

</mosaic_0001>

<bundles_post_ra>
// kernel: tpu_custom_call.1
= control target key start
LH: loop header
LB: loop body
LE: loop exit
PB: predicated region body
PF: predicated region fallthrough
CT: control target
= control target key end

     0   :  { %s121_s0 = inlined_call_operand.vmem [shape: f32[8,32], index: 0, kind: input, shape index: {}]   ;;  %s122_s1 = inlined_call_operand.vmem [shape: f32[32,8], index: 1, kind: input, shape index: {}]   ;;  %s123_s2 = inlined_call_operand.hbm [shape: f32[8,8], index: 2, kind: output, shape index: {}]  }
   0x1   :  { %v16_v0 = vld [vmem:[%s122_s1 + $0x18] sm:$0xff]  ;;  %v15_v1 = vld [vmem:[%s122_s1 + $0x10] sm:$0xff] }
   0x2   :  { %33 = vmatpush.msra.mxu0 %v16_v0 }
   0x3   :  { %7 = vsyncpa [#allocation3], 0  ;;  %v14_v2 = vld [vmem:[%s122_s1 + $0x8] sm:$0xff]  ;;  %v13_v3 = vld [vmem:[%s122_s1] sm:$0xff]  ;;  %vm17_vm0 = vcmask 261120   ;;  %s87_s19 = smov [#allocation2]  }
   0x4   :  { %34 = vmatpush.msra.mxu0 %v15_v1  ;;  %v12_v4 = vld [vmem:[%s121_s0] sm:$0xff]  ;;  %s48_s20 = sshll.u32 %s87_s19, 4  ;;  %s50_s23 = sshll.u32 %s123_s2, 4  ;;  %vm41_vm1 = vcmask 64512   ;;  %s49_s20 = int_to_ptr.vmem [resolvable:$true] %s48_s20  ;;  %s51_s23 = int_to_ptr.hbm [resolvable:$true] %s50_s23 }
   0x6   :  { %35 = vmatpush.msra.mxu0 %v14_v2 }
   0x8   :  { %36 = vmatpush.msra.mxu0 %v13_v3 }
   0x9   :  { %59 = vmatmul.msk.f32.vlgmr.msra.gmra.mxu0 %vm17_vm0, %v12_v4 }
  0x86   :  { %v38_v5 = vpop.f32.mrf.mxu0 }
  0x87   :  { %42 = vst.msk [vmem:[#allocation2] sm:$0xff] %vm41_vm1, %v38_v5 }
  0x88   :  { %53 = dma.vmem_to_hbm [thread:$0]  %s49_s20, 128, %s51_s23, [#allocation3]  }
  0x89   :  { %85 = dma.done.wait [#allocation3], 128  }
  0x8a   :  { %86 = vsyncadd [#allocation3], 4294967168 }
  0x8b   :  { %58 = vsyncpa [#allocation3], 1 }

</bundles_post_ra>
